<compile_context>
chip_gen: v5e
topology: v5e:2x2
jax: 0.10.0
libtpu: 0.0.40
codegen_flags: <defaults>
</compile_context>

<pallas_src>
import jax
import jax.numpy as jnp
from jax import lax
from jax.experimental import pallas as pl
from jax.experimental.pallas import tpu as pltpu

# ----------------------------- problem sizes (small, forward-consistent) -----------------------------
B_IMG     = 2            # number of images
N_PATCH   = 100          # hardcoded in the PyTorch forward: .view(-1, 100, n_classes)
D_IMG     = 128          # d_embed[0]  (kept small; default in module is 384)
D_TXT     = 256          # d_embed[1]  (kept small; default in module is 768)
N_CLASSES = 5
B_TXT     = 4            # number of text samples
SEQ_LEN   = 8
VOCAB     = 64
C, H, W   = 4, 20, 20    # B_IMG*C*H*W == B_IMG*N_PATCH*16  -> 16-dim raw patch vectors
PATCH_DIM = (C * H * W) // N_PATCH   # 16
K_FUSED   = PATCH_DIM + D_TXT        # 272: fused projection contraction depth

# lane-dense output slab; wrapper slices the (B_IMG, B_TXT) corner
OUT_ROWS  = 8
OUT_LANES = 128


# ----------------------------- Pallas kernel: fully fused CLIP head -----------------------------
def clip_head_kernel(imgp_ref, txt_ref, w_ref, b_ref, out_ref):
    # 1) Patch mean commuted ahead of the (linear) encoder + projection: one XLU sublane reduce.
    pooled = jnp.mean(imgp_ref[...], axis=1)                         # (B_IMG, PATCH_DIM) f32

    # 2) Build the fused-projection LHS: image rows live in the first PATCH_DIM columns, text rows
    #    in the remaining D_TXT columns; the zero blocks contribute nothing to the contraction.
    img_lhs = jnp.concatenate(
        [pooled, jnp.zeros((B_IMG, D_TXT), jnp.float32)], axis=1)    # (B_IMG, K_FUSED)
    txt_lhs = jnp.concatenate(
        [jnp.zeros((B_TXT, PATCH_DIM), jnp.float32), txt_ref[...]], axis=1)  # (B_TXT, K_FUSED)
    lhs = jnp.concatenate([img_lhs, txt_lhs], axis=0)                # (B_IMG+B_TXT, K_FUSED)

    # 3) ONE fused MXU dot for both projections (bf16 operands, f32 accumulation) + packed bias.
    embed = jnp.dot(lhs.astype(jnp.bfloat16), w_ref[...],
                    preferred_element_type=jnp.float32) + b_ref[...]  # (B_IMG+B_TXT, N_CLASSES)

    # 4) Shared L2 normalization with rsqrt*x (EUP slot).  No epsilon, matching torch.norm
    #    reference behavior; precondition: no all-zero embedding row.
    embed = embed * lax.rsqrt(jnp.sum(embed * embed, axis=-1, keepdims=True))

    # 5) Logits = img_embed @ txt_embed.T on a minimal (8,5)x(8,5)->(8,8) dot.  Padding happens
    #    AFTER normalization so everything outside the (B_IMG, B_TXT) corner is an exact zero.
    img_pad = jnp.concatenate(
        [embed[:B_IMG], jnp.zeros((OUT_ROWS - B_IMG, N_CLASSES), jnp.float32)], axis=0)
    txt_pad = jnp.concatenate(
        [embed[B_IMG:], jnp.zeros((OUT_ROWS - B_TXT, N_CLASSES), jnp.float32)], axis=0)
    logits8 = lax.dot_general(img_pad, txt_pad, (((1,), (1,)), ((), ())),
                              preferred_element_type=jnp.float32)    # (8, 8)

    # 6) Lane-pad to a dense (8, 128) slab: the store is a single unmasked full-tile vst
    #    (important on v5e's single vector-store slot).
    out_ref[...] = jnp.concatenate(
        [logits8, jnp.zeros((OUT_ROWS, OUT_LANES - OUT_ROWS), jnp.float32)], axis=1)


def clip_head(img_patches, text_pooled, w_fused, bias_rows):
    """img_patches: (B_IMG, N_PATCH, PATCH_DIM) f32; text_pooled: (B_TXT, D_TXT) f32;
    w_fused: (K_FUSED, N_CLASSES) bf16; bias_rows: (B_IMG+B_TXT, N_CLASSES) f32
    -> logits (B_IMG, B_TXT)."""
    vmem = pl.BlockSpec(memory_space=pltpu.MemorySpace.VMEM)
    padded = pl.pallas_call(
        clip_head_kernel,
        out_shape=jax.ShapeDtypeStruct((OUT_ROWS, OUT_LANES), jnp.float32),
        in_specs=[vmem] * 4,
        out_specs=vmem,
    )(img_patches, text_pooled, w_fused, bias_rows)
    # TODO(synk): consumer could take the padded (8,128) slab directly and fuse the corner slice.
    return padded[:B_IMG, :B_TXT]


# ----------------------------- synthetic encoder stubs -----------------------------
# TODO(synk): ImageEncoder / TextEncoder are injected dependencies of the PyTorch CLIP module; they
# are replaced by deterministic synthetic stubs.  The image stub is a pure linear map (W_enc),
# which lets its matmul and the patch mean be folded into the fused projection inside the kernel
# (with a real non-linear ViT, encode first and keep the original ordering).  The text stub
# (embedding gather + mean pool) stays as plain JAX glue.
def text_encoder_stub(input_ids, emb_table):
    # pooler_output stub: mean-pooled token embeddings, (B_TXT, D_TXT)
    return jnp.mean(emb_table[input_ids], axis=1)


def clip_forward(img, text, params):
    # NCHW -> per-image raw patches (pure metadata reshape, no data movement)
    img_patches = img.reshape(B_IMG, N_PATCH, PATCH_DIM)
    text_pooled = text_encoder_stub(text["input_ids"], params["emb_table"])

    # Static per-call weight folding (in a real deployment precompute these once):
    #  * image branch weight: W_enc @ W_img_proj -> (PATCH_DIM, N_CLASSES)
    #  * both projection weights stacked along K so the kernel runs ONE fused MXU dot
    #  * per-row packed bias (image rows then text rows)
    w_img_fused = params["w_enc"] @ params["w_img_proj"]
    w_fused = jnp.concatenate([w_img_fused, params["w_txt_proj"]],
                              axis=0).astype(jnp.bfloat16)
    bias_rows = jnp.concatenate(
        [jnp.broadcast_to(params["b_img_proj"], (B_IMG, N_CLASSES)),
         jnp.broadcast_to(params["b_txt_proj"], (B_TXT, N_CLASSES))],
        axis=0).astype(jnp.float32)

    return clip_head(img_patches, text_pooled.astype(jnp.float32), w_fused, bias_rows)


# ----------------------------- pure-JAX reference (f32) for sanity checking -----------------------------
def clip_reference(img, text, params):
    feats = img.reshape(B_IMG * N_PATCH, PATCH_DIM) @ params["w_enc"]
    img_e = feats @ params["w_img_proj"] + params["b_img_proj"]
    img_e = img_e.reshape(B_IMG, N_PATCH, N_CLASSES).mean(axis=1)
    img_e = img_e / jnp.linalg.norm(img_e, axis=-1, keepdims=True)
    txt_p = text_encoder_stub(text["input_ids"], params["emb_table"])
    txt_e = txt_p @ params["w_txt_proj"] + params["b_txt_proj"]
    txt_e = txt_e / jnp.linalg.norm(txt_e, axis=-1, keepdims=True)
    return img_e @ txt_e.T


# ----------------------------- deterministic parameter init -----------------------------
def init_params(key):
    ks = jax.random.split(key, 6)
    return {
        "w_enc":      jax.random.normal(ks[0], (PATCH_DIM, D_IMG), jnp.float32) * 0.05,
        "emb_table":  jax.random.normal(ks[1], (VOCAB, D_TXT), jnp.float32) * 0.05,
        "w_img_proj": jax.random.normal(ks[2], (D_IMG, N_CLASSES), jnp.float32) * 0.05,
        "b_img_proj": jax.random.normal(ks[3], (N_CLASSES,), jnp.float32) * 0.05,
        "w_txt_proj": jax.random.normal(ks[4], (D_TXT, N_CLASSES), jnp.float32) * 0.05,
        "b_txt_proj": jax.random.normal(ks[5], (N_CLASSES,), jnp.float32) * 0.05,
    }


if __name__ == "__main__":
    key = jax.random.PRNGKey(0)
    k_img, k_txt, k_par = jax.random.split(key, 3)

    img = jax.random.normal(k_img, (B_IMG, C, H, W), jnp.float32)          # NCHW
    text = {"input_ids": jax.random.randint(k_txt, (B_TXT, SEQ_LEN), 0, VOCAB)}
    params = init_params(k_par)

    fwd = jax.jit(clip_forward)      # single dispatch for wrapper folding ops + the Pallas kernel
    logits = fwd(img, text, params)
    jax.block_until_ready(logits)
    assert logits.shape == (B_IMG, B_TXT)

    # loose tolerance: the kernel runs its fused projection in bf16 (f32 accumulation)
    ref = clip_reference(img, text, params)
    assert jnp.allclose(logits, ref, atol=5e-2, rtol=5e-2), (logits, ref)

    print("KERNEL_OK")
</pallas_src>

<mosaic_0001>
module attributes {stable_mosaic.version = 11 : i64} {
  func.func @clip_head_kernel(%arg0: memref<2x100x16xf32, #tpu.memory_space<vmem>>, %arg1: memref<4x256xf32, #tpu.memory_space<vmem>>, %arg2: memref<272x5xbf16, #tpu.memory_space<vmem>>, %arg3: memref<6x5xf32, #tpu.memory_space<vmem>>, %arg4: memref<8x128xf32, #tpu.memory_space<vmem>>) attributes {dimension_semantics = [], scalar_prefetch = 0 : i64, scratch_operands = 0 : i64, tpu.core_type = #tpu.core_type<tc>} {
    %c0 = arith.constant 0 : index
    %c0_0 = arith.constant 0 : index
    %c0_1 = arith.constant 0 : index
    %0 = vector.load %arg0[%c0, %c0_0, %c0_1] : memref<2x100x16xf32, #tpu.memory_space<vmem>>, vector<2x100x16xf32>
    %cst = arith.constant dense<0.000000e+00> : vector<2x16xf32>
    %1 = vector.multi_reduction <add>, %0, %cst [1] : vector<2x100x16xf32> to vector<2x16xf32>
    %cst_2 = arith.constant 1.000000e+02 : f32
    %2 = vector.broadcast %cst_2 : f32 to vector<2x16xf32>
    %3 = arith.divf %1, %2 : vector<2x16xf32>
    %cst_3 = arith.constant 0.000000e+00 : f32
    %4 = vector.broadcast %cst_3 : f32 to vector<2x256xf32>
    %5 = tpu.concatenate %3, %4 in 1 : vector<2x16xf32>, vector<2x256xf32> -> vector<2x272xf32>
    %cst_4 = arith.constant 0.000000e+00 : f32
    %6 = vector.broadcast %cst_4 : f32 to vector<4x16xf32>
    %c0_5 = arith.constant 0 : index
    %c0_6 = arith.constant 0 : index
    %7 = vector.load %arg1[%c0_5, %c0_6] : memref<4x256xf32, #tpu.memory_space<vmem>>, vector<4x256xf32>
    %8 = tpu.concatenate %6, %7 in 1 : vector<4x16xf32>, vector<4x256xf32> -> vector<4x272xf32>
    %9 = tpu.concatenate %5, %8 in 0 : vector<2x272xf32>, vector<4x272xf32> -> vector<6x272xf32>
    %10 = arith.truncf %9 : vector<6x272xf32> to vector<6x272xbf16>
    %c0_7 = arith.constant 0 : index
    %c0_8 = arith.constant 0 : index
    %11 = vector.load %arg2[%c0_7, %c0_8] : memref<272x5xbf16, #tpu.memory_space<vmem>>, vector<272x5xbf16>
    %cst_9 = arith.constant dense<0.000000e+00> : vector<6x5xf32>
    %12 = tpu.matmul %10, %11, %cst_9 {dimension_numbers = #tpu.dot_dimension_numbers<[1], [0], [0], [1], [0, 0, 1, 1], [], []>} : vector<6x272xbf16>, vector<272x5xbf16>, vector<6x5xf32> -> vector<6x5xf32>
    %c0_10 = arith.constant 0 : index
    %c0_11 = arith.constant 0 : index
    %13 = vector.load %arg3[%c0_10, %c0_11] : memref<6x5xf32, #tpu.memory_space<vmem>>, vector<6x5xf32>
    %14 = arith.addf %12, %13 : vector<6x5xf32>
    %15 = arith.mulf %14, %14 : vector<6x5xf32>
    %cst_12 = arith.constant dense<0.000000e+00> : vector<6xf32>
    %16 = vector.multi_reduction <add>, %15, %cst_12 [1] : vector<6x5xf32> to vector<6xf32>
    %17 = vector.shape_cast %16 : vector<6xf32> to vector<6x1xf32>
    %18 = math.rsqrt %17 : vector<6x1xf32>
    %19 = vector.broadcast %18 : vector<6x1xf32> to vector<6x5xf32>
    %20 = arith.mulf %14, %19 : vector<6x5xf32>
    %21 = vector.extract_strided_slice %20 {offsets = [0, 0], sizes = [2, 5], strides = [1, 1]} : vector<6x5xf32> to vector<2x5xf32>
    %cst_13 = arith.constant 0.000000e+00 : f32
    %22 = vector.broadcast %cst_13 : f32 to vector<6x5xf32>
    %23 = tpu.concatenate %21, %22 in 0 : vector<2x5xf32>, vector<6x5xf32> -> vector<8x5xf32>
    %24 = vector.extract_strided_slice %20 {offsets = [2, 0], sizes = [4, 5], strides = [1, 1]} : vector<6x5xf32> to vector<4x5xf32>
    %cst_14 = arith.constant 0.000000e+00 : f32
    %25 = vector.broadcast %cst_14 : f32 to vector<4x5xf32>
    %26 = tpu.concatenate %24, %25 in 0 : vector<4x5xf32>, vector<4x5xf32> -> vector<8x5xf32>
    %cst_15 = arith.constant dense<0.000000e+00> : vector<8x8xf32>
    %27 = tpu.matmul %23, %26, %cst_15 {dimension_numbers = #tpu.dot_dimension_numbers<[1], [1], [0], [0], [0, 0, 1, 0], [], []>} : vector<8x5xf32>, vector<8x5xf32>, vector<8x8xf32> -> vector<8x8xf32>
    %cst_16 = arith.constant 0.000000e+00 : f32
    %28 = vector.broadcast %cst_16 : f32 to vector<8x120xf32>
    %29 = tpu.concatenate %27, %28 in 1 : vector<8x8xf32>, vector<8x120xf32> -> vector<8x128xf32>
    %c0_17 = arith.constant 0 : index
    %c0_18 = arith.constant 0 : index
    %30 = vector.load %arg4[%c0_17, %c0_18] : memref<8x128xf32, #tpu.memory_space<vmem>>, vector<8x128xf32>
    tpu.vector_store %arg4[%c0_17, %c0_18], %29 {strides = array<i32>} : memref<8x128xf32, #tpu.memory_space<vmem>>, vector<8x128xf32>,
    return
  }
}

</mosaic_0001>

<bundles_post_ra>
// kernel: clip_forward.1
= control target key start
LH: loop header
LB: loop body
LE: loop exit
PB: predicated region body
PF: predicated region fallthrough
CT: control target
= control target key end

     0   :  { %s488_s6 = smov 16   ;;  %vm44_vm0 = vcmask 130048   ;;  %vm68_vm1 = vcmask 125952   ;;  %vm119_vm3 = vcmask 1041409   ;;  %vm142_vm4 = vcmask 1041408   ;;  %s685_s1 = inlined_call_operand.vmem [shape: f32[4,256], index: 1, kind: input, shape index: {}]   ;;  %s686_s2 = inlined_call_operand.vmem [shape: bf16[272,5], index: 2, kind: input, shape index: {}]   ;;  %s687_s0 = inlined_call_operand.vmem [shape: f32[2,100,16], index: 0, kind: input, shape index: {}]   ;;  %s688_s3 = inlined_call_operand.vmem [shape: f32[6,5], index: 3, kind: input, shape index: {}]   ;;  %s689_s4 = inlined_call_operand.vmem [shape: f32[8,128], index: 4, kind: output, shape index: {}]  }
   0x1   :  { %v123_v0 = vld [vmem:[%s685_s1] sm:$0xff]  ;;  %v475_v1 = vld [vmem:[%s686_s2 + $0x78] sm:$0xff]  ;;  %v474_v3 = vld [vmem:[%s686_s2 + $0x70] sm:$0xff]  ;;  %vm329_vm7 = vcmask 37888   ;;  %vm348_vm11 = vcmask 1043456   ;;  %vm350_vm12 = vcmask 39936  }
   0x2   :  { %v467_v2 = vld [vmem:[%s686_s2 + $0x38] sm:$0xff]  ;;  %125 = vst [vmem:[#allocation1] ss:$2 sm:$0xff] %v123_v0  ;;  %302 = vmatpush.bf16.msra.mxu1 %v475_v1  ;;  %v466_v4 = vld [vmem:[%s686_s2 + $0x30] sm:$0xff]  ;;  %v473_v5 = vld [vmem:[%s686_s2 + $0x68] sm:$0xff]  ;;  %vm377_vm13 = vcmask 64512  }
   0x3   :  { %289 = vmatpush.bf16.msra.mxu0 %v467_v2  ;;  %v465_v6 = vld [vmem:[%s686_s2 + $0x28] sm:$0xff]  ;;  %v472_v10 = vld [vmem:[%s686_s2 + $0x60] sm:$0xff]  ;;  %v471_v12 = vld [vmem:[%s686_s2 + $0x58] sm:$0xff] }
   0x4   :  { %v464_v11 = vld [vmem:[%s686_s2 + $0x20] sm:$0xff]  ;;  %v463_v13 = vld [vmem:[%s686_s2 + $0x18] sm:$0xff]  ;;  %v470_v14 = vld [vmem:[%s686_s2 + $0x50] sm:$0xff] }
   0x5   :  { %v462_v15 = vld [vmem:[%s686_s2 + $0x10] sm:$0xff]  ;;  %v18_v16 = vld [vmem:[%s687_s0] sm:$0xff]  ;;  %v19_v17 = vld [vmem:[%s687_s0 + $0x8] sm:$0xff] }
   0x6   :  { %303 = vmatpush.bf16.msra.mxu1 %v474_v3  ;;  %v31_v18 = vld [vmem:[%s687_s0 + $0x68] sm:$0xff]  ;;  %v32_v19 = vld [vmem:[%s687_s0 + $0x70] sm:$0xff]  ;;  %v45_v20 = vsel %vm44_vm0, %v18_v16, 0.0  ;;  %v46_v21 = vsel %vm44_vm0, %v19_v17, 0.0  ;;  %v33_v24 = vld [vmem:[%s687_s0 + $0x78] sm:$0xff] }
   0x7   :  { %290 = vmatpush.bf16.msra.mxu0 %v466_v4  ;;  %v77_v22 = vsel %vm44_vm0, %v31_v18, 0.0  ;;  %v20_v23 = vld [vmem:[%s687_s0 + $0x10] sm:$0xff]  ;;  %v47_v25 = vadd.f32 %v46_v21, %v45_v20  ;;  %v78_v26 = vsel %vm44_vm0, %v32_v19, 0.0  ;;  %v80_v29 = vsel %vm44_vm0, %v33_v24, 0.0  ;;  %v21_v30 = vld [vmem:[%s687_s0 + $0x18] sm:$0xff]  ;;  %v34_v31 = vld [vmem:[%s687_s0 + $0x80] sm:$0xff] }
   0x8   :  { %v48_v27 = vsel %vm44_vm0, %v20_v23, 0.0  ;;  %v79_v28 = vadd.f32 %v78_v26, %v77_v22  ;;  %v50_v33 = vsel %vm44_vm0, %v21_v30, 0.0  ;;  %v82_v35 = vsel %vm44_vm0, %v34_v31, 0.0  ;;  %v22_v36 = vld [vmem:[%s687_s0 + $0x20] sm:$0xff]  ;;  %v35_v37 = vld [vmem:[%s687_s0 + $0x88] sm:$0xff]  ;;  %v36_v43 = vld [vmem:[%s687_s0 + $0x90] sm:$0xff] }
   0x9   :  { %v126_v7 = vld.sshfl [vmem:[#allocation1] sm:$0xff pattern:$0x75316420]  ;;  %v127_v8 = vld.sshfl [vmem:[#allocation1 + $0x8] sm:$0xff pattern:$0x75316420]  ;;  %v49_v32 = vadd.f32 %v48_v27, %v47_v25  ;;  %vm452_vm5 = vmneg %vm142_vm4 }
   0xa   :  { %v479_v9 = vpack.i.bf16 %v126_v7, %v127_v8  ;;  %304 = vmatpush.bf16.msra.mxu1 %v473_v5  ;;  %v81_v34 = vadd.f32 %v80_v29, %v79_v28  ;;  %v52_v39 = vsel %vm44_vm0, %v22_v36, 0.0  ;;  %v84_v41 = vsel %vm44_vm0, %v35_v37, 0.0  ;;  %v23_v42 = vld [vmem:[%s687_s0 + $0x28] sm:$0xff]  ;;  %v24_v48 = vld [vmem:[%s687_s0 + $0x30] sm:$0xff]  ;;  %v37_v49 = vld [vmem:[%s687_s0 + $0x98] sm:$0xff] }
   0xb   :  { %291 = vmatpush.bf16.msra.mxu0 %v465_v6  ;;  %v51_v38 = vadd.f32 %v50_v33, %v49_v32  ;;  %v54_v45 = vsel %vm44_vm0, %v23_v42, 0.0  ;;  %v86_v47 = vsel %vm44_vm0, %v36_v43, 0.0  ;;  %v56_v51 = vsel %vm44_vm0, %v24_v48, 0.0  ;;  %v25_v54 = vld [vmem:[%s687_s0 + $0x38] sm:$0xff]  ;;  %v38_v55 = vld [vmem:[%s687_s0 + $0xa0] sm:$0xff]  ;;  %v39_v61 = vld [vmem:[%s687_s0 + $0xa8] sm:$0xff] }
   0xc   :  { %480 = vrot.lane.b32.xlu0 %v479_v9, %s488_s6  ;;  %v83_v40 = vadd.f32 %v82_v35, %v81_v34  ;;  %v88_v53 = vsel %vm44_vm0, %v37_v49, 0.0  ;;  %v58_v57 = vsel %vm44_vm0, %v25_v54, 0.0  ;;  %v90_v59 = vsel %vm44_vm0, %v38_v55, 0.0  ;;  %v26_v60 = vld [vmem:[%s687_s0 + $0x40] sm:$0xff]  ;;  %v27_v2 = vld [vmem:[%s687_s0 + $0x48] sm:$0xff]  ;;  %v40_v3 = vld [vmem:[%s687_s0 + $0xb0] sm:$0xff] }
   0xd   :  { %v53_v44 = vadd.f32 %v52_v39, %v51_v38  ;;  %v60_v0 = vsel %vm44_vm0, %v26_v60, 0.0  ;;  %v92_v1 = vsel %vm44_vm0, %v39_v61, 0.0  ;;  %v62_v6 = vsel %vm44_vm0, %v27_v2, 0.0  ;;  %v28_v8 = vld [vmem:[%s687_s0 + $0x50] sm:$0xff]  ;;  %v41_v9 = vld [vmem:[%s687_s0 + $0xb8] sm:$0xff]  ;;  %v469_v26 = vld [vmem:[%s686_s2 + $0x48] sm:$0xff] }
   0xe   :  { %305 = vmatpush.bf16.msra.mxu1 %v472_v10  ;;  %v85_v46 = vadd.f32 %v84_v41, %v83_v40  ;;  %v94_v7 = vsel %vm44_vm0, %v40_v3, 0.0  ;;  %v30_v20 = vld [vmem:[%s687_s0 + $0x60] sm:$0xf]  ;;  %v43_v21 = vld [vmem:[%s687_s0 + $0xc8] sm:$0xf]  ;;  %v489_v30 = vmov 100.0   ;;  %vm454_vm6 = vmpackc.low %vm452_vm5, %vm452_vm5 }
   0xf   :  { %292 = vmatpush.bf16.msra.mxu0 %v464_v11  ;;  %v55_v50 = vadd.f32 %v54_v45, %v53_v44  ;;  %v69_v24 = vsel %vm68_vm1, %v30_v20, 0.0  ;;  %v100_v25 = vsel %vm68_vm1, %v43_v21, 0.0  ;;  %v461_v27 = vld [vmem:[%s686_s2 + $0x8] sm:$0xff]  ;;  %484 = vrcp.f32 %v489_v30  ;;  %v468_v31 = vld [vmem:[%s686_s2 + $0x40] sm:$0xff] }
  0x10   :  { %v87_v52 = vadd.f32 %v86_v47, %v85_v46  ;;  %v476_v32 = vld [vmem:[%s686_s2 + $0x80] sm:$0xff] }
  0x11   :  { %v57_v56 = vadd.f32 %v56_v51, %v55_v50  ;;  %v460_v33 = vld [vmem:[%s686_s2] sm:$0xff]  ;;  %322 = vmatpush.bf16.msra.mxu2 %v476_v32 }
  0x12   :  { %306 = vmatpush.bf16.msra.mxu1 %v471_v12  ;;  %v89_v58 = vadd.f32 %v88_v53, %v87_v52  ;;  %v64_v12 = vsel %vm44_vm0, %v28_v8, 0.0 }
  0x13   :  { %293 = vmatpush.bf16.msra.mxu0 %v463_v13  ;;  %v59_v62 = vadd.f32 %v58_v57, %v57_v56  ;;  %v96_v13 = vsel %vm44_vm0, %v41_v9, 0.0 }
  0x14   :  { %v91_v63 = vadd.f32 %v90_v59, %v89_v58 }
  0x15   :  { %v61_v4 = vadd.f32 %v60_v0, %v59_v62  ;;  %v485_v36 = vpop.eup %484 }
  0x16   :  { %307 = vmatpush.bf16.msra.mxu1 %v470_v14  ;;  %v93_v5 = vadd.f32 %v92_v1, %v91_v63  ;;  %v29_v14 = vld [vmem:[%s687_s0 + $0x58] sm:$0xff]  ;;  %v109_v39 = vmul.f32 100.0, %v485_v36  ;;  %vm113_vm2 = vweird.f32 %v485_v36 }
  0x17   :  { %294 = vmatpush.bf16.msra.mxu0 %v462_v15  ;;  %v63_v10 = vadd.f32 %v62_v6, %v61_v4  ;;  %v42_v15 = vld [vmem:[%s687_s0 + $0xc0] sm:$0xff]  ;;  %v66_v18 = vsel %vm44_vm0, %v29_v14, 0.0 }
  0x18   :  { %v95_v11 = vadd.f32 %v94_v7, %v93_v5  ;;  %v98_v19 = vsel %vm44_vm0, %v42_v15, 0.0  ;;  %v110_v42 = vsub.f32 1.0, %v109_v39  ;;  %v183_v5 = vld [vmem:[%s688_s3] sm:$0x3f] }
  0x19   :  { %v65_v16 = vadd.f32 %v64_v12, %v63_v10 }
  0x1a   :  { %v97_v17 = vadd.f32 %v96_v13, %v95_v11  ;;  %308 = vmatpush.bf16.msra.mxu1 %v469_v26  ;;  %v111_v45 = vmul.f32 %v485_v36, %v110_v42 }
  0x1b   :  { %v67_v22 = vadd.f32 %v66_v18, %v65_v16  ;;  %295 = vmatpush.bf16.msra.mxu0 %v461_v27 }
  0x1c   :  { %v99_v23 = vadd.f32 %v98_v19, %v97_v17  ;;  %v112_v48 = vadd.f32 %v485_v36, %v111_v45 }
  0x1d   :  { %v70_v28 = vadd.f32 %v69_v24, %v67_v22 }
  0x1e   :  { %v101_v29 = vadd.f32 %v100_v25, %v99_v23  ;;  %309 = vmatpush.bf16.msra.mxu1 %v468_v31  ;;  %v114_v51 = vsel %vm113_vm2, %v485_v36, %v112_v48 }
  0x1f   :  { %v71_v34 = vrot.slane %v70_v28, 4  ;;  %296 = vmatpush.bf16.msra.mxu0 %v460_v33 }
  0x20   :  { %v102_v35 = vrot.slane %v101_v29, 4 }
  0x21   :  { %v72_v37 = vadd.f32 %v71_v34, %v70_v28 }
  0x22   :  { %v103_v38 = vadd.f32 %v102_v35, %v101_v29 }
  0x23   :  { %v73_v40 = vrot.slane %v72_v37, 2 }
  0x24   :  { %v104_v41 = vrot.slane %v103_v38, 2 }
  0x25   :  { %v74_v43 = vadd.f32 %v73_v40, %v72_v37 }
  0x26   :  { %v105_v44 = vadd.f32 %v104_v41, %v103_v38 }
  0x27   :  { %v75_v46 = vrot.slane %v74_v43, 1 }
  0x28   :  { %v106_v47 = vrot.slane %v105_v44, 1 }
  0x29   :  { %v76_v49 = vadd.f32 %v75_v46, %v74_v43 }
  0x2a   :  { %v107_v50 = vadd.f32 %v106_v47, %v105_v44 }
  0x2b   :  { %v115_v52 = vmul.f32 %v114_v51, %v76_v49 }
  0x2c   :  { %v116_v53 = vmul.f32 %v114_v51, %v107_v50 }
  0x2e   :  { %v120_v55 = vsel %vm119_vm3, %v116_v53, %v115_v52 }
  0x2f   :  { %v122_v61 = vsel %vm44_vm0, %v120_v55, 0.0 }
  0x7e   :  { %v481_v54 = vpop.permute.xlu0 %480 }
  0x7f   :  { %v483_v56 = vunpack.i.h.bf16 %v481_v54  ;;  %v482_v57 = vunpack.i.l.bf16 %v481_v54 }
  0x81   :  { %v134_v58 = vsel %vm44_vm0, 0.0, %v483_v56  ;;  %v138_v59 = vrot.slane %v482_v57, 6  ;;  %v132_v60 = vsel %vm44_vm0, %v483_v56, %v482_v57 }
  0x82   :  { %v136_v62 = vrot.slane %v134_v58, 6  ;;  %v137_v63 = vrot.slane %v132_v60, 6 }
  0x83   :  { %v145_v0 = vsel %vm142_vm4, 0.0, %v138_v59 }
  0x84   :  { %v455_v1 = vpack.c.bf16 %v137_v63, %v137_v63  ;;  %v148_v2 = vpack.c.bf16 %v145_v0, %v145_v0  ;;  %v143_v3 = vsel %vm142_vm4, %v122_v61, %v136_v62 }
  0x85   :  { %v146_v4 = vpack.c.bf16 %v143_v3, %v143_v3 }
  0x86   :  { %456 = vmatmul.msk.bf16.vlgmr.msra.gmra.mxu1 %vm454_vm6, %v455_v1  ;;  %457 = vmatmul.msk.bf16.vlgmr.msra.gmra.mxu2 %vm44_vm0, %v148_v2 }
  0x87   :  { %297 = vmatmul.bf16.vlgmr.msra.gmra.mxu0 %v146_v4 }
 0x103   :  { %v311_v6 = vpop.f32.mrf.mxu1 }
 0x104   :  { %v298_v7 = vpop.f32.mrf.mxu0 }
 0x105   :  { %v299_v8 = vadd.f32 %v298_v7, %v183_v5 }
 0x107   :  { %v312_v9 = vadd.f32 %v311_v6, %v299_v8 }
 0x109   :  { %v324_v10 = vpop.f32.mrf.mxu2 }
 0x10a   :  { %v325_v11 = vadd.f32 %v324_v10, %v312_v9 }
 0x10b   :  { %v313_v12 = vpop.f32.mrf.mxu1 }
 0x10c   :  { %v300_v13 = vpop.f32.mrf.mxu0  ;;  %v328_v14 = vmul.f32 %v325_v11, %v325_v11 }
 0x10e   :  { %v330_v15 = vsel %vm329_vm7, %v328_v14, 0.0 }
 0x10f   :  { %331 = vadd.xlane.f32.xlu0 %v330_v15 }
 0x111   :  { %v326_v16 = vpop.f32.mrf.mxu2 }
 0x182   :  { %v332_v17 = vpop.xlane.xlu0 %331 }
 0x183   :  { %486 = vrsqrt.f32 %v332_v17  ;;  %vm339_vm9 = vweird.f32 %v332_v17 }
 0x189   :  { %v487_v18 = vpop.eup %486 }
 0x18a   :  { %v334_v19 = vmul.f32 %v487_v18, %v332_v17  ;;  %vm340_vm8 = vweird.f32 %v487_v18 }
 0x18b   :  { %vm341_vm10 = vmor %vm339_vm9, %vm340_vm8 }
 0x18c   :  { %v335_v20 = vmul.f32 %v487_v18, %v334_v19 }
 0x18e   :  { %v336_v21 = vmul.f32 0.5, %v335_v20 }
 0x190   :  { %v337_v22 = vsub.f32 1.5, %v336_v21 }
 0x192   :  { %v338_v23 = vmul.f32 %v487_v18, %v337_v22 }
 0x194   :  { %v342_v24 = vsel %vm341_vm10, %v487_v18, %v338_v23 }
 0x195   :  { %v343_v25 = vmul.f32 %v342_v24, %v325_v11 }
 0x197   :  { %v346_v26 = vrot.slane %v343_v25, 2  ;;  %v344_v28 = vsel %vm142_vm4, %v343_v25, 0.0 }
 0x199   :  { %v349_v27 = vsel %vm348_vm11, %v346_v26, 0.0 }
 0x19a   :  { %458 = vmatpush.xpose.msk.msra.mxu3 %vm350_vm12, %v349_v27 }
 0x19d   :  { %459 = vmatmul.msk.f32.vlgmr.msra.gmra.mxu3 %vm350_vm12, %v344_v28 }
 0x220   :  { %v374_v29 = vpop.f32.mrf.mxu3 }
 0x221   :  { %v378_v30 = vsel %vm377_vm13, %v374_v29, 0.0 }
 0x222   :  { %379 = vst [vmem:[%s689_s4] sm:$0xff] %v378_v30 }

</bundles_post_ra>
